<compile_context>
chip_gen: v5e
topology: v5e:2x2
jax: 0.10.0
libtpu: 0.0.40
codegen_flags: <defaults>
</compile_context>

<pallas_src>
import functools

import jax
import jax.numpy as jnp
from jax.experimental import pallas as pl
from jax.experimental.pallas import tpu as pltpu


def _ce_label_smooth_kernel(
    logits_ref, targets_ref, out_ref, *, epsilon, num_classes, n_rows, tile_n, ragged
):
    """One batch tile: (tile_n, C) logits + (tile_n, 1) int32 targets -> partial sum."""
    i = pl.program_id(0)

    # Upcast in-register; HBM traffic stays at the input dtype (e.g. bf16).
    x = logits_ref[...].astype(jnp.float32)                      # (tile_n, C)
    t = targets_ref[...]                                         # (tile_n, 1) int32

    # Numerically stable log-softmax pieces.
    m = jnp.max(x, axis=1, keepdims=True)                        # (tile_n, 1)
    z = x - m                                                    # (tile_n, C)
    lse = jnp.log(jnp.sum(jnp.exp(z), axis=1, keepdims=True))    # (tile_n, 1)

    # Fused weighted reduction: the smoothed weights sum to 1 over classes, so
    #   row_loss = -sum_c(w_c * (z_c - lse)) = lse - sum_c(w_c * z_c)
    # with w_c = eps/C everywhere and (1 - eps + eps/C) on the target column.
    uniform = epsilon / num_classes
    col = jax.lax.broadcasted_iota(jnp.int32, x.shape, 1)                    # (tile_n, C)
    w = jnp.where(col == t, 1.0 - epsilon + uniform, uniform)                # (tile_n, C)
    row_loss = lse - jnp.sum(w * z, axis=1, keepdims=True)                   # (tile_n, 1)

    if ragged:
        # Only emitted when N % tile_n != 0. The select discards NaN/Inf coming
        # from padded garbage rows of the final partial tile.
        row_idx = i * tile_n + jax.lax.broadcasted_iota(jnp.int32, row_loss.shape, 0)
        row_loss = jnp.where(row_idx < n_rows, row_loss, 0.0)

    # Per-tile partial sum, broadcast into a lane-dense (8, 128) block
    # (unmasked stores); lane/sublane [0, 0] is read back outside the kernel.
    out_ref[...] = jnp.broadcast_to(jnp.sum(row_loss), out_ref.shape).astype(jnp.float32)


def _vmem_config():
    """(budget_bytes, vmem_limit_bytes), generation-dependent."""
    try:
        cap = pltpu.get_tpu_info().vmem_capacity_bytes
    except Exception:
        cap = 64 * 1024 * 1024  # assume the smallest (v7x-like) VMEM if unknown
    if cap >= 128 * 1024 * 1024:                 # v5e / v6e: 128 MiB physical
        return 48 * 1024 * 1024, 64 * 1024 * 1024
    return 24 * 1024 * 1024, 32 * 1024 * 1024    # v7x: 64 MiB physical, 32 MiB scoped


def _pick_tile_n(n, c, itemsize, vmem_budget_bytes):
    """Largest batch tile whose double-buffered inputs + live f32 working copies
    fit the per-generation VMEM budget."""
    # 2 double-buffered input copies (input dtype) + ~5 f32 working copies
    # (f32 upcast, z, exp(z), weights, weighted product).
    per_row = c * (2 * itemsize + 5 * 4)
    t = max(1, vmem_budget_bytes // max(per_row, 1))
    t = min(t, n)
    if t >= n:
        return int(n)                             # full-extent block
    # dtype-aware packing: f32 -> 8 rows/vreg, bf16 -> 16, int8/fp8 -> 32
    align = 8 * max(1, 4 // max(int(itemsize), 1))
    t = max(8, (t // align) * align)
    # TODO(synk): for vocab-scale C even an 8-row f32 working set can exceed the
    #             budget; class-axis chunking (online logsumexp) is the real fix.
    return int(min(t, n))


def cross_entropy_label_smooth(logits, targets, num_classes, epsilon=0.1, tile_n=None):
    """logits: (N, C) float (f32 or bf16 - bf16 halves HBM reads on v5e/v6e);
    targets: (N,) int class indices (assumed in [0, C); out-of-range indices are
    treated as weight 0 rather than raising, unlike PyTorch).

    Returns the scalar mean label-smoothed cross-entropy (float32), matching
    PyTorch CrossEntropyLabelSmooth.forward.
    """
    n, c = logits.shape
    assert c == num_classes
    targets2d = targets.astype(jnp.int32).reshape(n, 1)

    vmem_budget, vmem_limit = _vmem_config()
    if tile_n is None:
        tile_n = _pick_tile_n(n, c, logits.dtype.itemsize, vmem_budget)
    tile_n = int(min(tile_n, n))
    num_tiles = int(pl.cdiv(n, tile_n))
    ragged = (n % tile_n) != 0

    kernel = functools.partial(
        _ce_label_smooth_kernel,
        epsilon=float(epsilon),
        num_classes=int(num_classes),
        n_rows=int(n),
        tile_n=tile_n,
        ragged=bool(ragged),
    )

    partials = pl.pallas_call(
        kernel,
        out_shape=jax.ShapeDtypeStruct((num_tiles, 8, 128), jnp.float32),
        grid=(num_tiles,),
        in_specs=[
            pl.BlockSpec((tile_n, c), lambda i: (i, 0)),
            pl.BlockSpec((tile_n, 1), lambda i: (i, 0)),
        ],
        # Each grid step owns its own (8,128)-aligned output block -> no cross-step
        # dependence, so the batch axis can be "parallel" (v7x megacore split).
        out_specs=pl.BlockSpec((1, 8, 128), lambda i: (i, 0, 0)),
        compiler_params=pltpu.CompilerParams(
            dimension_semantics=("parallel",),
            vmem_limit_bytes=vmem_limit,
        ),
    )(logits, targets2d)

    # Final reduction + mean in plain JAX (f32), outside the kernel.
    return jnp.sum(partials[:, 0, 0]) / jnp.float32(n)


def _reference(logits, targets, num_classes, epsilon=0.1):
    # Pure-JAX reference mirroring the PyTorch forward.
    log_probs = jax.nn.log_softmax(logits.astype(jnp.float32), axis=1)
    onehot = jax.nn.one_hot(targets, num_classes, dtype=jnp.float32)
    smoothed = (1.0 - epsilon) * onehot + epsilon / num_classes
    return jnp.mean(jnp.sum(-smoothed * log_probs, axis=1))


if __name__ == "__main__":
    key = jax.random.PRNGKey(0)
    k1, k2, k3, k4 = jax.random.split(key, 4)

    num_classes = 128
    epsilon = 0.1

    # 1) Multi-tile, divisible batch: N=32, tile_n=8 -> 4 parallel tiles, no masking.
    n1 = 32
    logits1 = jax.random.normal(k1, (n1, num_classes), dtype=jnp.float32)
    targets1 = jax.random.randint(k2, (n1,), 0, num_classes, dtype=jnp.int32)
    loss1 = jax.block_until_ready(
        cross_entropy_label_smooth(logits1, targets1, num_classes, epsilon, tile_n=8)
    )
    ref1 = _reference(logits1, targets1, num_classes, epsilon)
    assert jnp.allclose(loss1, ref1, atol=1e-5, rtol=1e-5), (loss1, ref1)

    # 2) Ragged batch: N=20, tile_n=8 -> partial last tile exercises masking path.
    n2 = 20
    logits2 = jax.random.normal(k3, (n2, num_classes), dtype=jnp.float32)
    targets2 = jax.random.randint(k4, (n2,), 0, num_classes, dtype=jnp.int32)
    loss2 = jax.block_until_ready(
        cross_entropy_label_smooth(logits2, targets2, num_classes, epsilon, tile_n=8)
    )
    ref2 = _reference(logits2, targets2, num_classes, epsilon)
    assert jnp.allclose(loss2, ref2, atol=1e-5, rtol=1e-5), (loss2, ref2)

    # 3) bf16 logits (HBM-bound generations), auto tile_n -> single full-extent tile.
    logits3 = logits1.astype(jnp.bfloat16)
    loss3 = jax.block_until_ready(
        cross_entropy_label_smooth(logits3, targets1, num_classes, epsilon)
    )
    ref3 = _reference(logits3, targets1, num_classes, epsilon)
    assert jnp.allclose(loss3, ref3, atol=1e-4, rtol=1e-4), (loss3, ref3)

    print("KERNEL_OK")
</pallas_src>

<mosaic_0001>
module attributes {stable_mosaic.version = 11 : i64} {
  func.func @_ce_label_smooth_kernel(%arg0: i32, %arg1: memref<8x128xf32, #tpu.memory_space<vmem>>, %arg2: memref<8x1xi32, #tpu.memory_space<vmem>>, %arg3: memref<1x8x128xf32, #tpu.memory_space<vmem>>) attributes {dimension_semantics = [#tpu.dimension_semantics<parallel>], iteration_bounds = array<i64: 4>, scalar_prefetch = 0 : i64, scratch_operands = 0 : i64, tpu.core_type = #tpu.core_type<tc>, window_params = [{transform_indices = @transform_0, window_bounds = array<i64: 8, 128>}, {transform_indices = @transform_1, window_bounds = array<i64: 8, 1>}, {transform_indices = @transform_2, window_bounds = array<i64: 1, 8, 128>}]} {
    %c0 = arith.constant 0 : index
    %c0_0 = arith.constant 0 : index
    %0 = vector.load %arg1[%c0, %c0_0] : memref<8x128xf32, #tpu.memory_space<vmem>>, vector<8x128xf32>
    %c0_1 = arith.constant 0 : index
    %c0_2 = arith.constant 0 : index
    %1 = vector.load %arg2[%c0_1, %c0_2] : memref<8x1xi32, #tpu.memory_space<vmem>>, vector<8x1xi32>
    %cst = arith.constant dense<0xFF800000> : vector<8xf32>
    %2 = vector.multi_reduction <maximumf>, %0, %cst [1] : vector<8x128xf32> to vector<8xf32>
    %3 = vector.shape_cast %2 : vector<8xf32> to vector<8x1xf32>
    %4 = vector.broadcast %3 : vector<8x1xf32> to vector<8x128xf32>
    %5 = arith.subf %0, %4 : vector<8x128xf32>
    %6 = math.exp %5 : vector<8x128xf32>
    %cst_3 = arith.constant dense<0.000000e+00> : vector<8xf32>
    %7 = vector.multi_reduction <add>, %6, %cst_3 [1] : vector<8x128xf32> to vector<8xf32>
    %8 = vector.shape_cast %7 : vector<8xf32> to vector<8x1xf32>
    %9 = math.log %8 : vector<8x1xf32>
    %10 = tpu.iota {dimensions = array<i32: 1>} : vector<8x128xi32>
    %11 = vector.broadcast %1 : vector<8x1xi32> to vector<8x128xi32>
    %12 = arith.cmpi eq, %10, %11 : vector<8x128xi32>
    %cst_4 = arith.constant 0.900781273 : f32
    %cst_5 = arith.constant 7.812500e-04 : f32
    %13 = vector.broadcast %cst_4 : f32 to vector<8x128xf32>
    %14 = vector.broadcast %cst_5 : f32 to vector<8x128xf32>
    %15 = arith.select %12, %13, %14 : vector<8x128xi1>, vector<8x128xf32>
    %16 = arith.mulf %15, %5 : vector<8x128xf32>
    %cst_6 = arith.constant dense<0.000000e+00> : vector<8xf32>
    %17 = vector.multi_reduction <add>, %16, %cst_6 [1] : vector<8x128xf32> to vector<8xf32>
    %18 = vector.shape_cast %17 : vector<8xf32> to vector<8x1xf32>
    %19 = arith.subf %9, %18 : vector<8x1xf32>
    %20 = vector.shape_cast %19 : vector<8x1xf32> to vector<1x8x1xf32>
    %cst_7 = arith.constant dense<0.000000e+00> : vector<1xf32>
    %21 = vector.multi_reduction <add>, %20, %cst_7 [1, 2] : vector<1x8x1xf32> to vector<1xf32>
    %22 = vector.shape_cast %21 : vector<1xf32> to vector<1x1x1xf32>
    %23 = vector.extract %22[0, 0, 0] : f32 from vector<1x1x1xf32>
    %24 = vector.broadcast %23 : f32 to vector<1x8x128xf32>
    %c0_8 = arith.constant 0 : index
    %c0_9 = arith.constant 0 : index
    %c0_10 = arith.constant 0 : index
    %25 = vector.load %arg3[%c0_8, %c0_9, %c0_10] : memref<1x8x128xf32, #tpu.memory_space<vmem>>, vector<1x8x128xf32>
    tpu.vector_store %arg3[%c0_8, %c0_9, %c0_10], %24 {strides = array<i32>} : memref<1x8x128xf32, #tpu.memory_space<vmem>>, vector<1x8x128xf32>,
    return
  }
  func.func @transform_0(%arg0: i32) -> (i32, i32) {
    %c0_i32 = arith.constant 0 : i32
    %c0_i32_0 = arith.constant 0 : i32
    return %arg0, %c0_i32 : i32, i32
  }
  func.func @transform_1(%arg0: i32) -> (i32, i32) {
    %c0_i32 = arith.constant 0 : i32
    %c0_i32_0 = arith.constant 0 : i32
    return %arg0, %c0_i32 : i32, i32
  }
  func.func @transform_2(%arg0: i32) -> (i32, i32, i32) {
    %c0_i32 = arith.constant 0 : i32
    %c0_i32_0 = arith.constant 0 : i32
    %c0_i32_1 = arith.constant 0 : i32
    return %arg0, %c0_i32, %c0_i32_0 : i32, i32, i32
  }
}

</mosaic_0001>

<bundles_post_ra>
// kernel: tpu_custom_call.1
= control target key start
LH: loop header
LB: loop body
LE: loop exit
PB: predicated region body
PF: predicated region fallthrough
CT: control target
= control target key end

     0   :  { %7 = vsyncpa [#allocation3], 0  ;;  %s506_s0 = inlined_call_operand.vmem [shape: f32[32,128], index: 0, kind: input, shape index: {}]   ;;  %s507_s1 = inlined_call_operand.vmem [shape: s32[32,1], index: 1, kind: input, shape index: {}]   ;;  %s508_s2 = inlined_call_operand.hbm [shape: f32[4,8,128], index: 2, kind: output, shape index: {}]  }
   0x1   :  { %9 = vsyncpa [#allocation3 + $0x1], 0  ;;  %s418_s9 = smov 0   ;;  %s420_s10 = smov 0  }
   0x2   :  { %s422_s11 = smov 0   ;;  %s424_s12 = smov 0  }
   0x3 LB: > { %s439_s13 = sadd.s32 4294967295, %s399_s12   ;;  %s278_s14 = sadd.s32 4294967294, %s399_s12   ;;  %s399_s12 = sphi %s424_s12, %s514_s12   ;;  %s395_s11 = sphi %s422_s11, %s513_s11   ;;  %s391_s10 = sphi %s420_s10, %s512_s10   ;;  %s387_s9 = sphi %s418_s9, %s511_s9  }
   0x4   : > { %s443_s15 = sadd.s32 1, %s399_s12   ;;  %s74_s16 = sadd.s32 1, %s395_s11 }
   0x5   : > { %s71_s17 = ssub.s32 %s399_s12, %s443_s15  ;;  %p84_p0 = scmp.ne.s32.totalorder %s395_s11, %s391_s10 }
   0x6   : > { %p72_p1 = scmp.eq.s32.totalorder %s71_s17, 0  ;;  %p85_p2 = scmp.eq.s32.totalorder %s439_s13, 3 }
   0x7   : > { %p90_p3 = scmp.ne.s32.totalorder %s391_s10, %s387_s9  ;;  %p91_p4 = scmp.eq.s32.totalorder %s278_s14, 3 }
   0x8   : > { %s454_s18 = scalar_select %p72_p1, %s395_s11, %s74_s16  }
   0x9   : > { %p456_p5 = por %p85_p2, %p84_p0  ;;  %p460_p6 = por %p91_p4, %p90_p3 }
   0xa   : > { %p281_p7 = scmp.ge.s32.totalorder %s399_s12, 1  ;;  %p123_p8 = scmp.lt.s32.totalorder %s399_s12, 5 }
   0xc   : > { %p124_p9 = pnand %p281_p7, %p123_p8 }
   0xd   : > { %p148_p10 = scmp.lt.s32.totalorder (!%p124_p9), %s439_s13, 3  ;;  %s145_s29 = sand.u32 (!%p124_p9), 1, %s391_s10  }
   0xe   : > { %127 = sbr.rel (%p124_p9) target bundleno = 464 (0x1d0), region = 28  ;;  %s282_s30 = sshll.u32 (!%p124_p9), %s145_s29, 3 }
   0xf   : > { %s286_s3 = sshll.u32 (!%p124_p9), %s439_s13, 3  ;;  %s147_s7 = scalar_lea.vmem (!%p124_p9), [#allocation2], %s282_s30 }
  0x10   : > { %s202_s6 = scalar_lea.hbm (!%p124_p9), %s508_s2, %s286_s3  ;;  %s204_s8 = sshll.u32 (!%p124_p9), %s147_s7, 4  ;;  %s205_s8 = int_to_ptr.vmem [resolvable:$true] %s204_s8 }
  0x11   : > { %s206_s14 = sshll.u32 (!%p124_p9), %s202_s6, 4  ;;  %s192_s17 = scalar_lea.sflag (!%p124_p9), [#allocation3], %s145_s29  ;;  %s207_s14 = int_to_ptr.hbm [resolvable:$true] %s206_s14 }
  0x12   : > { %s357_s24 = scalar_lea.hbm (!%p124_p9), %s508_s2, 32 }
  0x13   : > { %v401_v0 = vmov 0   ;;  %s149_s21 = scalar_select %p148_p10, %s439_s13, 3  ;;  %v167_v7 = vlaneseq  ;;  %v402_v10 = vmov 0.00078125   ;;  %vm178_vm1 = vcmask 7168  }
  0x14   : > { %332 = vset.pattern.permute.xlu0 %v401_v0 }
  0x15   : > { %s283_s22 = sshll.u32 %s149_s21, 3  ;;  %v168_v8 = vand.u32 127, %v167_v7  ;;  %s351_s21 = sshra.s32 %s207_s14, 4  ;;  %s352_s21 = int_to_ptr.hbm [resolvable:$true] %s351_s21 }
  0x16   : > { %s151_s25 = scalar_lea.vmem %s506_s0, %s283_s22  ;;  %s155_s28 = scalar_lea.vmem %s507_s1, %s283_s22 }
  0x17   : > { %v156_v1 = vld [vmem:[%s151_s25] sm:$0xff]  ;;  %s353_s22 = scalar_lea.hbm %s352_s21, 8  ;;  %p358_p0 = scmp.lt.s32.totalorder %s352_s21, %s508_s2 }
  0x18   : > { %158 = vmax.xlane.f32.xlu0 %v156_v1  ;;  %v157_v2 = vld [vmem:[%s155_s28] sm:$0xff]  ;;  %p354_p11 = scmp.ne.s32.totalorder %s352_s21, %s353_s22  ;;  %p359_p1 = scmp.lt.s32.totalorder %s357_s24, %s353_s22 }
  0x1a   : > { %p355_p12 = pnand %p354_p11, %p456_p5  ;;  %p360_p2 = por %p359_p1, %p358_p0 }
  0x1c   : > { %p356_p13 = pneg %p355_p12 }
  0x1e   : > { %p361_p3 = pnand %p360_p2, %p356_p13 }
  0x2c   : > { %170 = vperm.xlu0 %332, %v157_v2  }
  0x8b   : > { %v159_v3 = vpop.xlane.xlu0 %158 }
  0x8c   : > { %v160_v4 = vsub.f32 %v156_v1, %v159_v3 }
  0x8e   : > { %v161_v5 = vmul.f32 1.442695, %v160_v4 }
  0x90   : > { %333 = vpow2.f32 %v161_v5 }
  0x96   : > { %v334_v6 = vpop.eup %333 }
  0x97   : > { %163 = vadd.xlane.f32.xlu1 %v334_v6 }
  0x9e   : > { %v171_v9 = vpop.permute.xlu0 %170 }
  0x9f   : > { %vm172_vm0 = vcmp.eq.s32.totalorder %v168_v8, %v171_v9 }
  0xa0   : > { %v173_v11 = vsel %vm172_vm0, 0.9007813, %v402_v10 }
  0xa1   : > { %v174_v12 = vmul.f32 %v173_v11, %v160_v4 }
  0xa3   : > { %175 = vadd.xlane.f32.xlu1 %v174_v12 }
 0x10a   : > { %v164_v13 = vpop.xlane.xlu1 %163 }
 0x10b   : > { %335 = vlog2.f32 %v164_v13 }
 0x111   : > { %v336_v14 = vpop.eup %335 }
 0x112   : > { %v166_v15 = vmul.f32 0.6931472, %v336_v14 }
 0x116   : > { %v176_v16 = vpop.xlane.xlu1 %175 }
 0x117   : > { %v177_v17 = vsub.f32 %v166_v15, %v176_v16 }
 0x119   : > { %v179_v18 = vsel %vm178_vm1, %v177_v17, 0.0 }
 0x11a   : > { %180 = vadd.xlane.f32.xlu2 %v179_v18 }
 0x18d   : > { %v181_v19 = vpop.xlane.xlu2 %180 }
 0x18e   : > { %v182_v20 = vrot.slane %v181_v19, 4 }
 0x190   : > { %v183_v21 = vadd.f32 %v182_v20, %v181_v19 }
 0x192   : > { %v184_v22 = vrot.slane %v183_v21, 2 }
 0x194   : > { %v185_v23 = vadd.f32 %v184_v22, %v183_v21 }
 0x196   : > { %v186_v24 = vrot.slane %v185_v23, 1 }
 0x198   : > { %v187_v25 = vadd.f32 %v186_v24, %v185_v23 }
 0x19a   : > { %289 = vpush %v187_v25 }
 0x1cb   : > { %s290_s16 = spop %289 }
 0x1cc   : > { %v189_v26 = vstv %s290_s16 }
 0x1cd   : > { %190 = vst [vmem:[%s147_s7] sm:$0xff] %v189_v26 }
 0x1ce   : > { %364 = shalt.err (!%p361_p3)
}
 0x1cf   : > { %291 = dma.vmem_to_hbm [thread:$0]  (%p456_p5), %s205_s8, 128, %s207_s14, %s192_s17  }
 0x1d0 PF: > { %p297_p4 = scmp.ge.s32.totalorder %s399_s12, 2  ;;  %s218_s27 = sand.u32 1, %s387_s9  }
 0x1d1   : > { %s219_s28 = scalar_lea.sflag [#allocation3], %s218_s27 }
 0x1d2   : > { %p294_p7 = pnand %p297_p4, %p460_p6 }
 0x1d4   : > { %p295_p8 = pneg %p294_p7 }
 0x1d6   : > { %382 = dma.done.wait (%p295_p8), %s219_s28, 128  }
 0x1d7   : > { %384 = vsyncadd (%p295_p8), %s219_s28, 4294967168  ;;  %p12_p9 = scmp.ge.s32.totalorder %s443_s15, 6   ;;  %s511_s9 = smov %s391_s10 }
 0x1d8   : > { %s512_s10 = smov %s395_s11  ;;  %s513_s11 = smov %s454_s18 }
 0x1d9   : > { %s514_s12 = smov %s443_s15  ;;  %14 = sbr.rel (!%p12_p9) target bundleno = 3 (0x3), region = 66 }
 0x1de   :  { %225 = vsyncpa [#allocation3], 1 }
 0x1df   :  { %227 = vsyncpa [#allocation3 + $0x1], 1 }

</bundles_post_ra>
